<compile_context>
chip_gen: v7x
topology: tpu7x:2x2x1
jax: 0.10.0
libtpu: 0.0.40
codegen_flags: <defaults>
</compile_context>

<pallas_src>
import functools
import math

import jax
import jax.numpy as jnp
from jax import lax
from jax.experimental import pallas as pl
from jax.experimental.pallas import tpu as pltpu


_VMEM_LIMIT = 48 * 1024 * 1024  # safe on v5e/v6e (128 MiB) and v7x (64 MiB)


# --------------------------------------------------------------------------
# Pallas kernels
# --------------------------------------------------------------------------

def _dense_kernel(x_ref, w_ref, b_ref, o_ref, *, activation):
    x = x_ref[...]                                   # [tm, K]  bf16
    w = w_ref[...]                                   # [K, tn]  bf16
    b = b_ref[...]                                   # [1, tn]  f32
    y = jnp.dot(x, w, preferred_element_type=jnp.float32) + b
    if activation == "gelu":
        # TODO(synk): HF BERT 'gelu' is exact erf-GELU; tanh approximation is
        # used here (difference ~1e-3, EUP-friendly on TPU).
        c = math.sqrt(2.0 / math.pi)
        y = 0.5 * y * (1.0 + jnp.tanh(c * (y + 0.044715 * y * y * y)))
    elif activation == "tanh":
        y = jnp.tanh(y)
    o_ref[...] = y.astype(o_ref.dtype)


def _layernorm_kernel(x_ref, g_ref, b_ref, o_ref, *, eps):
    x = x_ref[...].astype(jnp.float32)               # [tm, H]
    mean = jnp.mean(x, axis=-1, keepdims=True)
    xc = x - mean
    var = jnp.mean(xc * xc, axis=-1, keepdims=True)
    inv = lax.rsqrt(var + eps)
    o_ref[...] = ((xc * inv) * g_ref[...] + b_ref[...]).astype(o_ref.dtype)


def _add_layernorm_kernel(a_ref, r_ref, g_ref, b_ref, o_ref, *, eps):
    # fused residual add + LayerNorm
    x = a_ref[...].astype(jnp.float32) + r_ref[...].astype(jnp.float32)
    mean = jnp.mean(x, axis=-1, keepdims=True)
    xc = x - mean
    var = jnp.mean(xc * xc, axis=-1, keepdims=True)
    inv = lax.rsqrt(var + eps)
    o_ref[...] = ((xc * inv) * g_ref[...] + b_ref[...]).astype(o_ref.dtype)


def _attn_kernel(qkv_ref, m_ref, o_ref, *, num_heads, scale):
    # qkv_ref: [1, S, 3H] bf16 (lane-dense), m_ref: [1, 1, S] f32 additive mask
    # TODO(synk): for very long sequences, tile over query blocks
    # (flash-style online softmax) to cap the [S,S] score tile in VMEM.
    H = o_ref.shape[2]
    Dh = H // num_heads
    qkv = qkv_ref[0]                                 # [S, 3H]
    mask = m_ref[0].astype(jnp.float32)              # [1, S]
    ctxs = []
    for h in range(num_heads):                       # static unrolled loop
        q = qkv[:, h * Dh:(h + 1) * Dh]
        k = qkv[:, H + h * Dh:H + (h + 1) * Dh]
        v = qkv[:, 2 * H + h * Dh:2 * H + (h + 1) * Dh]
        # scores = q @ k^T  (contract on head dim, no explicit transpose)
        s = lax.dot_general(q, k, (((1,), (1,)), ((), ())),
                            preferred_element_type=jnp.float32)
        s = s * scale + mask                         # mask broadcasts over rows
        s = s - jnp.max(s, axis=-1, keepdims=True)
        p = jnp.exp(s)
        p = p * pl.reciprocal(jnp.sum(p, axis=-1, keepdims=True), approx=True)
        ctxs.append(jnp.dot(p.astype(qkv.dtype), v,
                            preferred_element_type=jnp.float32))
    # single lane-dense [S, H] store
    o_ref[0] = jnp.concatenate(ctxs, axis=-1).astype(o_ref.dtype)


def _pool_nsp_kernel(x_ref, pw_ref, pb_ref, nw_ref, nb_ref, o_ref):
    # pooler tanh(W @ cls) + NSP classifier + softmax(dim=1) + probs[:,0]*5
    x = x_ref[...]                                   # [B, H] bf16
    pooled = jnp.tanh(jnp.dot(x, pw_ref[...],
                              preferred_element_type=jnp.float32) + pb_ref[...])
    logits = jnp.dot(pooled, nw_ref[...].astype(jnp.float32),
                     preferred_element_type=jnp.float32) + nb_ref[...]
    logits = logits - jnp.max(logits, axis=1, keepdims=True)
    e = jnp.exp(logits)
    probs = e / jnp.sum(e, axis=1, keepdims=True)    # exact div for final output
    o_ref[...] = probs[:, 0:1] * 5.0


# --------------------------------------------------------------------------
# Wrappers (pallas_call plumbing)
# --------------------------------------------------------------------------

def dense(x, w, b, activation=None, out_dtype=jnp.bfloat16,
          tm_target=256, tn_target=512):
    M, K = x.shape
    N = w.shape[1]
    tm = M if M <= tm_target else tm_target
    tn = N if N <= tn_target else tn_target
    kern = functools.partial(_dense_kernel, activation=activation)
    return pl.pallas_call(
        kern,
        out_shape=jax.ShapeDtypeStruct((M, N), out_dtype),
        grid=(pl.cdiv(M, tm), pl.cdiv(N, tn)),
        in_specs=[pl.BlockSpec((tm, K), lambda i, j: (i, 0)),
                  pl.BlockSpec((K, tn), lambda i, j: (0, j)),
                  pl.BlockSpec((1, tn), lambda i, j: (0, j))],
        out_specs=pl.BlockSpec((tm, tn), lambda i, j: (i, j)),
        compiler_params=pltpu.CompilerParams(
            dimension_semantics=("parallel", "parallel"),
            vmem_limit_bytes=_VMEM_LIMIT),
    )(x, w, b.reshape(1, N))


def layernorm(x, g, b, eps=1e-12, out_dtype=jnp.bfloat16, tm_target=512):
    M, H = x.shape
    tm = M if M <= tm_target else tm_target
    kern = functools.partial(_layernorm_kernel, eps=eps)
    return pl.pallas_call(
        kern,
        out_shape=jax.ShapeDtypeStruct((M, H), out_dtype),
        grid=(pl.cdiv(M, tm),),
        in_specs=[pl.BlockSpec((tm, H), lambda i: (i, 0)),
                  pl.BlockSpec((1, H), lambda i: (0, 0)),
                  pl.BlockSpec((1, H), lambda i: (0, 0))],
        out_specs=pl.BlockSpec((tm, H), lambda i: (i, 0)),
        compiler_params=pltpu.CompilerParams(
            dimension_semantics=("parallel",),
            vmem_limit_bytes=_VMEM_LIMIT),
    )(x, g.reshape(1, H), b.reshape(1, H))


def add_layernorm(a, r, g, b, eps=1e-12, out_dtype=jnp.bfloat16, tm_target=512):
    M, H = a.shape
    tm = M if M <= tm_target else tm_target
    kern = functools.partial(_add_layernorm_kernel, eps=eps)
    return pl.pallas_call(
        kern,
        out_shape=jax.ShapeDtypeStruct((M, H), out_dtype),
        grid=(pl.cdiv(M, tm),),
        in_specs=[pl.BlockSpec((tm, H), lambda i: (i, 0)),
                  pl.BlockSpec((tm, H), lambda i: (i, 0)),
                  pl.BlockSpec((1, H), lambda i: (0, 0)),
                  pl.BlockSpec((1, H), lambda i: (0, 0))],
        out_specs=pl.BlockSpec((tm, H), lambda i: (i, 0)),
        compiler_params=pltpu.CompilerParams(
            dimension_semantics=("parallel",),
            vmem_limit_bytes=_VMEM_LIMIT),
    )(a, r, g.reshape(1, H), b.reshape(1, H))


def attention(qkv, ext_mask, num_heads):
    # qkv: [B, S, 3H] bf16 (lane-dense), ext_mask: [B, 1, S] f32
    B, S, H3 = qkv.shape
    H = H3 // 3
    Dh = H // num_heads
    kern = functools.partial(_attn_kernel, num_heads=num_heads,
                             scale=1.0 / math.sqrt(Dh))
    return pl.pallas_call(
        kern,
        out_shape=jax.ShapeDtypeStruct((B, S, H), qkv.dtype),
        grid=(B,),
        in_specs=[pl.BlockSpec((1, S, H3), lambda b: (b, 0, 0)),
                  pl.BlockSpec((1, 1, S), lambda b: (b, 0, 0))],
        out_specs=pl.BlockSpec((1, S, H), lambda b: (b, 0, 0)),
        compiler_params=pltpu.CompilerParams(
            dimension_semantics=("parallel",),
            vmem_limit_bytes=_VMEM_LIMIT),
    )(qkv, ext_mask)


def pool_nsp_head(cls, pool_w, pool_b, nsp_w, nsp_b):
    B, H = cls.shape
    return pl.pallas_call(
        _pool_nsp_kernel,
        out_shape=jax.ShapeDtypeStruct((B, 1), jnp.float32),
        grid=(1,),
        in_specs=[pl.BlockSpec((B, H), lambda i: (0, 0)),
                  pl.BlockSpec((H, H), lambda i: (0, 0)),
                  pl.BlockSpec((1, H), lambda i: (0, 0)),
                  pl.BlockSpec((H, 2), lambda i: (0, 0)),
                  pl.BlockSpec((1, 2), lambda i: (0, 0))],
        out_specs=pl.BlockSpec((B, 1), lambda i: (0, 0)),
        compiler_params=pltpu.CompilerParams(
            dimension_semantics=("arbitrary",),
            vmem_limit_bytes=_VMEM_LIMIT),
    )(cls, pool_w, pool_b.reshape(1, H), nsp_w, nsp_b.reshape(1, 2))


# --------------------------------------------------------------------------
# Model (glue in plain JAX, hot paths in kernels above)
# --------------------------------------------------------------------------

def bert_layer(p, x, ext_mask, B, S):
    # x: [B*S, H] bf16
    H = x.shape[1]
    NH = p["num_heads"]

    # Fused Q/K/V projection: one [M,H] x [H,3H] matmul, no HBM transposes.
    qkv = dense(x, p["wqkv"], p["bqkv"])                       # [B*S, 3H] bf16
    ctx = attention(qkv.reshape(B, S, 3 * H), ext_mask, NH)    # [B, S, H] bf16
    attn_out = dense(ctx.reshape(B * S, H), p["wo"], p["bo"])  # [B*S, H]

    # TODO(synk): dropout layers omitted (inference / identity).
    x1 = add_layernorm(attn_out, x, p["ln1_g"], p["ln1_b"])    # fused residual

    inter = dense(x1, p["wi"], p["bi"], activation="gelu")
    out = dense(inter, p["wo2"], p["bo2"])
    x2 = add_layernorm(out, x1, p["ln2_g"], p["ln2_b"])
    return x2


def custom_sts_forward(params, input_ids, attention_mask, token_type_ids):
    B, S = input_ids.shape
    H = params["word_emb"].shape[1]

    pos_ids = jnp.arange(S)
    emb = (params["word_emb"][input_ids]
           + params["pos_emb"][pos_ids][None, :, :]
           + params["type_emb"][token_type_ids])               # f32 [B,S,H]
    x = layernorm(emb.reshape(B * S, H),
                  params["emb_ln_g"], params["emb_ln_b"])      # bf16 [B*S,H]

    # HF extended attention mask: (1 - mask) * -10000, broadcastable [B,1,S]
    ext_mask = ((1.0 - attention_mask.astype(jnp.float32))
                [:, None, :] * -10000.0)

    for layer in params["layers"]:
        x = bert_layer(layer, x, ext_mask, B, S)

    # Pooler + NSP classifier + softmax + probs[:,0]*5, single fused kernel.
    cls = x.reshape(B, S, H)[:, 0, :]                          # [B, H] bf16
    probs5 = pool_nsp_head(cls, params["pool_w"], params["pool_b"],
                           params["nsp_w"], params["nsp_b"])   # [B, 1] f32
    return probs5[:, 0]                                        # [B]


# --------------------------------------------------------------------------
# Deterministic parameter init (synthetic "pretrained" weights)
# --------------------------------------------------------------------------

def init_params(key, *, vocab, H, NH, I, L, max_pos, types):
    keys = iter(jax.random.split(key, 16 + 8 * L))

    def w32(shape, scale=0.02):
        return (scale * jax.random.normal(next(keys), shape)).astype(jnp.float32)

    def wbf(shape, scale=0.02):
        return (scale * jax.random.normal(next(keys), shape)).astype(jnp.bfloat16)

    zeros = lambda *s: jnp.zeros(s, jnp.float32)
    ones = lambda *s: jnp.ones(s, jnp.float32)

    params = dict(
        word_emb=w32((vocab, H)),
        pos_emb=w32((max_pos, H)),
        type_emb=w32((types, H)),
        emb_ln_g=ones(H), emb_ln_b=zeros(H),
        pool_w=wbf((H, H)), pool_b=zeros(H),
        nsp_w=wbf((H, 2)), nsp_b=zeros(2),
        layers=[],
    )
    for _ in range(L):
        params["layers"].append(dict(
            num_heads=NH,
            wqkv=wbf((H, 3 * H)), bqkv=zeros(3 * H),   # fused Q|K|V
            wo=wbf((H, H)), bo=zeros(H),
            ln1_g=ones(H), ln1_b=zeros(H),
            wi=wbf((H, I)), bi=zeros(I),
            wo2=wbf((I, H)), bo2=zeros(H),
            ln2_g=ones(H), ln2_b=zeros(H),
        ))
    return params


# --------------------------------------------------------------------------

if __name__ == "__main__":
    B, S = 2, 8
    VOCAB, H, NH, I, L, MAXPOS = 100, 32, 4, 64, 2, 16

    root = jax.random.PRNGKey(0)
    pkey, idkey = jax.random.split(root)

    params = init_params(pkey, vocab=VOCAB, H=H, NH=NH, I=I, L=L,
                         max_pos=MAXPOS, types=2)

    input_ids = jax.random.randint(idkey, (B, S), 0, VOCAB, dtype=jnp.int32)
    attention_mask = jnp.ones((B, S), jnp.int32).at[1, 6:].set(0)
    token_type_ids = jnp.zeros((B, S), jnp.int32).at[:, S // 2:].set(1)

    out = custom_sts_forward(params, input_ids, attention_mask, token_type_ids)
    out = jax.block_until_ready(out)

    assert out.shape == (B,), out.shape
    assert bool(jnp.all(out >= 0.0)) and bool(jnp.all(out <= 5.0))
    print("KERNEL_OK")
</pallas_src>

<mosaic_0001>
module attributes {stable_mosaic.version = 11 : i64} {
  func.func @_layernorm_kernel(%arg0: i32, %arg1: memref<16x32xf32, #tpu.memory_space<vmem>>, %arg2: memref<1x32xf32, #tpu.memory_space<vmem>>, %arg3: memref<1x32xf32, #tpu.memory_space<vmem>>, %arg4: memref<16x32xbf16, #tpu.memory_space<vmem>>) attributes {dimension_semantics = [#tpu.dimension_semantics<parallel>], iteration_bounds = array<i64: 1>, scalar_prefetch = 0 : i64, scratch_operands = 0 : i64, tpu.core_type = #tpu.core_type<tc>, window_params = [{transform_indices = @transform_0, window_bounds = array<i64: 16, 32>}, {pipeline_mode = #tpu.pipeline_mode<synchronous>, transform_indices = @transform_1, window_bounds = array<i64: 1, 32>}, {pipeline_mode = #tpu.pipeline_mode<synchronous>, transform_indices = @transform_2, window_bounds = array<i64: 1, 32>}, {transform_indices = @transform_3, window_bounds = array<i64: 16, 32>}]} {
    %c0 = arith.constant 0 : index
    %c0_0 = arith.constant 0 : index
    %0 = vector.load %arg1[%c0, %c0_0] : memref<16x32xf32, #tpu.memory_space<vmem>>, vector<16x32xf32>
    %cst = arith.constant dense<0.000000e+00> : vector<16xf32>
    %1 = vector.multi_reduction <add>, %0, %cst [1] : vector<16x32xf32> to vector<16xf32>
    %2 = vector.shape_cast %1 : vector<16xf32> to vector<16x1xf32>
    %cst_1 = arith.constant 3.200000e+01 : f32
    %3 = vector.broadcast %cst_1 : f32 to vector<16x1xf32>
    %4 = arith.divf %2, %3 : vector<16x1xf32>
    %5 = vector.broadcast %4 : vector<16x1xf32> to vector<16x32xf32>
    %6 = arith.subf %0, %5 : vector<16x32xf32>
    %7 = arith.mulf %6, %6 : vector<16x32xf32>
    %cst_2 = arith.constant dense<0.000000e+00> : vector<16xf32>
    %8 = vector.multi_reduction <add>, %7, %cst_2 [1] : vector<16x32xf32> to vector<16xf32>
    %9 = vector.shape_cast %8 : vector<16xf32> to vector<16x1xf32>
    %cst_3 = arith.constant 3.200000e+01 : f32
    %10 = vector.broadcast %cst_3 : f32 to vector<16x1xf32>
    %11 = arith.divf %9, %10 : vector<16x1xf32>
    %cst_4 = arith.constant 9.99999996E-13 : f32
    %12 = vector.broadcast %cst_4 : f32 to vector<16x1xf32>
    %13 = arith.addf %11, %12 : vector<16x1xf32>
    %14 = math.rsqrt %13 : vector<16x1xf32>
    %15 = vector.broadcast %14 : vector<16x1xf32> to vector<16x32xf32>
    %16 = arith.mulf %6, %15 : vector<16x32xf32>
    %c0_5 = arith.constant 0 : index
    %c0_6 = arith.constant 0 : index
    %17 = vector.load %arg2[%c0_5, %c0_6] : memref<1x32xf32, #tpu.memory_space<vmem>>, vector<1x32xf32>
    %18 = vector.broadcast %17 : vector<1x32xf32> to vector<16x32xf32>
    %19 = arith.mulf %16, %18 : vector<16x32xf32>
    %c0_7 = arith.constant 0 : index
    %c0_8 = arith.constant 0 : index
    %20 = vector.load %arg3[%c0_7, %c0_8] : memref<1x32xf32, #tpu.memory_space<vmem>>, vector<1x32xf32>
    %21 = vector.broadcast %20 : vector<1x32xf32> to vector<16x32xf32>
    %22 = arith.addf %19, %21 : vector<16x32xf32>
    %23 = arith.truncf %22 : vector<16x32xf32> to vector<16x32xbf16>
    %c0_9 = arith.constant 0 : index
    %c0_10 = arith.constant 0 : index
    %24 = vector.load %arg4[%c0_9, %c0_10] : memref<16x32xbf16, #tpu.memory_space<vmem>>, vector<16x32xbf16>
    tpu.vector_store %arg4[%c0_9, %c0_10], %23 {strides = array<i32>} : memref<16x32xbf16, #tpu.memory_space<vmem>>, vector<16x32xbf16>,
    return
  }
  func.func @transform_0(%arg0: i32) -> (i32, i32) {
    %c0_i32 = arith.constant 0 : i32
    %c0_i32_0 = arith.constant 0 : i32
    return %arg0, %c0_i32 : i32, i32
  }
  func.func @transform_1(%arg0: i32) -> (i32, i32) {
    %c0_i32 = arith.constant 0 : i32
    %c0_i32_0 = arith.constant 0 : i32
    %c0_i32_1 = arith.constant 0 : i32
    return %c0_i32, %c0_i32_0 : i32, i32
  }
  func.func @transform_2(%arg0: i32) -> (i32, i32) {
    %c0_i32 = arith.constant 0 : i32
    %c0_i32_0 = arith.constant 0 : i32
    %c0_i32_1 = arith.constant 0 : i32
    return %c0_i32, %c0_i32_0 : i32, i32
  }
  func.func @transform_3(%arg0: i32) -> (i32, i32) {
    %c0_i32 = arith.constant 0 : i32
    %c0_i32_0 = arith.constant 0 : i32
    return %arg0, %c0_i32 : i32, i32
  }
}

</mosaic_0001>

<bundles_post_ra>
// kernel: tpu_custom_call.1
= control target key start
LH: loop header
LB: loop body
LE: loop exit
PB: predicated region body
PF: predicated region fallthrough
CT: control target
= control target key end

     0   :  { %8 = vsyncpa [#allocation3], 0  ;;  %s229_s0 = inlined_call_operand.hbm [shape: f32[16,32], index: 0, kind: input, shape index: {}]   ;;  %s230_s1 = inlined_call_operand.vmem [shape: f32[1,32], index: 1, kind: input, shape index: {}]   ;;  %s231_s2 = inlined_call_operand.vmem [shape: f32[1,32], index: 2, kind: input, shape index: {}]   ;;  %s232_s3 = inlined_call_operand.hbm [shape: bf16[16,32], index: 3, kind: output, shape index: {}]  }
   0x1   :  { %9 = vsyncpa [#allocation4], 0  ;;  %s169_s12 = smov [#allocation2]   ;;  %s121_s16 = scalar_lea.hbm %s229_s0, 256 }
   0x2   :  { %s15_s13 = sshll.u32 %s169_s12, 4  ;;  %p122_p0 = scmp.ne.s32.totalorder %s229_s0, %s121_s16  ;;  %s16_s13 = int_to_ptr.vmem [resolvable:$true] %s15_s13 }
   0x3   :  { %p125_p1 = scmp.lt.u32.totalorder %s121_s16, %s229_s0 }
   0x5   :  { %p127_p2 = pnand %p125_p1, %p122_p0 }
   0x7   :  { %130 = shalt.err (!%p127_p2)
}
   0x8   :  { %s131_s21 = scalar_lea.vmem %s16_s13, 256  ;;  %p136_p4 = scmp.lt.s32.totalorder %s16_s13, %s16_s13 }
   0x9   :  { %p132_p3 = scmp.ne.s32.totalorder %s16_s13, %s131_s21  ;;  %p137_p5 = scmp.lt.s32.totalorder %s131_s21, %s131_s21 }
   0xb   :  { %p138_p6 = por %p137_p5, %p136_p4 }
   0xd   :  { %p139_p7 = pnand %p138_p6, %p132_p3 }
   0xf   :  { %142 = shalt.err (!%p139_p7)
}
  0x10   :  { %s170_s22 = smov 128   ;;  %s171_s23 = smov 8  }
  0x11   :  { %21 = dma.hbm_to_vmem [thread:$0]  %s229_s0, 256, %s16_s13, [#allocation3], %s170_s22, %s170_s22, %s171_s23  }
  0x12   :  { %165 = dma.done.wait [#allocation3], 256  }
  0x13   :  { %166 = vsyncadd [#allocation3], 4294967040  ;;  %vm31_vm0 = vcmask 261120   ;;  %v29_v0 = vld [vmem:[#allocation2] sm:$0xff]  ;;  %v30_v1 = vld [vmem:[#allocation2 + $0x8] sm:$0xff]  ;;  %vm85_vm1 = vcmask 257024  }
  0x14   :  { %v32_v2 = vsel %vm31_vm0, %v29_v0, 0.0  ;;  %v35_v3 = vsel %vm31_vm0, %v30_v1, 0.0  ;;  %v105_v21 = vld [vmem:[%s230_s1] ss:$0 sm:$0xff]  ;;  %s172_s29 = smov [#allocation5]  }
  0x15   :  { %33 = vadd.xlane.f32.xlu0 %v32_v2  ;;  %v106_v23 = vld [vmem:[%s231_s2] ss:$0 sm:$0xff]  ;;  %s93_s30 = sshll.u32 %s172_s29, 4  ;;  %s94_s30 = int_to_ptr.vmem [resolvable:$true] %s93_s30 }
  0x16   :  { %s143_s1 = scalar_lea.vmem %s94_s30, 128  ;;  %p148_p9 = scmp.lt.s32.totalorder %s94_s30, %s94_s30 }
  0x17   :  { %p144_p8 = scmp.ne.s32.totalorder %s94_s30, %s143_s1  ;;  %p149_p10 = scmp.lt.s32.totalorder %s143_s1, %s143_s1 }
  0x19   :  { %36 = vadd.xlane.f32.xlu0 %v35_v3  ;;  %p150_p11 = por %p149_p10, %p148_p9 }
  0x1b   :  { %p151_p12 = pnand %p150_p11, %p144_p8 }
  0xa2   :  { %v34_v4 = vpop.xlane.xlu0 %33 }
  0xa3   :  { %v39_v5 = vmul.f32 0.03125, %v34_v4 }
  0xa5   :  { %v41_v6 = vsub.f32 %v29_v0, %v39_v5 }
  0xa6   :  { %v37_v7 = vpop.xlane.xlu0 %36 }
  0xa7   :  { %v40_v8 = vmul.f32 0.03125, %v37_v7  ;;  %v43_v9 = vmul.f32 %v41_v6, %v41_v6 }
  0xa9   :  { %v42_v10 = vsub.f32 %v30_v1, %v40_v8  ;;  %v45_v11 = vsel %vm31_vm0, %v43_v9, 0.0 }
  0xaa   :  { %46 = vadd.xlane.f32.xlu1 %v45_v11 }
  0xab   :  { %v44_v12 = vmul.f32 %v42_v10, %v42_v10 }
  0xad   :  { %v48_v13 = vsel %vm31_vm0, %v44_v12, 0.0 }
  0xae   :  { %49 = vadd.xlane.f32.xlu1 %v48_v13 }
 0x137   :  { %v47_v14 = vpop.xlane.xlu1 %46 }
 0x138   :  { %v51_v15 = vmul.f32 0.03125, %v47_v14 }
 0x13a   :  { %v53_v16 = vadd.f32 1e-12, %v51_v15 }
 0x13b   :  { %v50_v17 = vpop.xlane.xlu1 %49 }
 0x13c   :  { %117 = vrsqrt.f32 %v53_v16  ;;  %v52_v18 = vmul.f32 0.03125, %v50_v17 }
 0x13e   :  { %v54_v19 = vadd.f32 1e-12, %v52_v18 }
 0x140   :  { %119 = vrsqrt.f32 %v54_v19 }
 0x146   :  { %v118_v20 = vpop.eup %117 }
 0x147   :  { %v57_v22 = vmul.f32 %v118_v20, %v41_v6 }
 0x149   :  { %v66_v24 = vmul.f32 %v105_v21, %v57_v22 }
 0x14a   :  { %v120_v25 = vpop.eup %119 }
 0x14b   :  { %v58_v26 = vmul.f32 %v120_v25, %v42_v10  ;;  %v75_v27 = vadd.f32 %v106_v23, %v66_v24 }
 0x14d   :  { %v67_v28 = vmul.f32 %v105_v21, %v58_v26  ;;  %v109_v29 = vpack.c.bf16 %v75_v27, %v75_v27 }
 0x14f   :  { %v76_v30 = vadd.f32 %v106_v23, %v67_v28  ;;  %86 = vst.msk [vmem:[#allocation5] sm:$0xf] %vm85_vm1, %v109_v29 }
 0x151   :  { %v110_v31 = vpack.c.bf16 %v76_v30, %v76_v30 }
 0x153   :  { %87 = vst.msk [vmem:[#allocation5 + $0x4] sm:$0xf] %vm85_vm1, %v110_v31 }
 0x154   :  { %154 = shalt.err (!%p151_p12)
}
 0x155   :  { %s155_s5 = scalar_lea.hbm %s232_s3, 128 }
 0x156   :  { %p156_p13 = scmp.ne.s32.totalorder %s232_s3, %s155_s5  ;;  %p159_p0 = scmp.lt.u32.totalorder %s155_s5, %s232_s3 }
 0x158   :  { %p161_p1 = pnand %p159_p0, %p156_p13 }
 0x15a   :  { %164 = shalt.err (!%p161_p1)
}
 0x15b   :  { %s173_s10 = smov 64   ;;  %s174_s11 = smov 4  }
 0x15c   :  { %99 = dma.vmem_to_hbm [thread:$0]  %s94_s30, 128, %s232_s3, [#allocation4], %s173_s10, %s173_s10, %s174_s11  }
 0x15d   :  { %167 = dma.done.wait [#allocation4], 128  }
 0x15e   :  { %168 = vsyncadd [#allocation4], 4294967168 }
 0x15f   :  { %103 = vsyncpa [#allocation3], 1 }
 0x160   :  { %104 = vsyncpa [#allocation4], 1 }

</bundles_post_ra>
